<compile_context>
chip_gen: v7x
topology: tpu7x:2x2x1
jax: 0.10.0
libtpu: 0.0.40
codegen_flags: <defaults>
</compile_context>

<pallas_src>
import jax
import jax.numpy as jnp
from jax.experimental import pallas as pl
from jax.experimental.pallas import tpu as pltpu


def dueling_dqn_kernel(x_ref,
                       w1_ref, b1_ref,
                       w2_ref, b2_ref,
                       wh1_ref, bh1_ref,
                       wh2_ref, bh2_ref,
                       q_ref):
    cdt = w1_ref.dtype          # matmul input dtype (bf16 or f32)
    x = x_ref[...]

    # fc1 + ReLU   (accumulate in f32, element-wise math in f32)
    h = jnp.dot(x, w1_ref[...], preferred_element_type=jnp.float32) + b1_ref[...]
    h = jnp.maximum(h, 0.0).astype(cdt)

    # fc2 + ReLU
    h = jnp.dot(h, w2_ref[...], preferred_element_type=jnp.float32) + b2_ref[...]
    h = jnp.maximum(h, 0.0).astype(cdt)

    # fused fc_value | fc_advantage + ReLU  -> [v_hid | a_hid]  (B, 64)
    h = jnp.dot(h, wh1_ref[...], preferred_element_type=jnp.float32) + bh1_ref[...]
    h = jnp.maximum(h, 0.0).astype(cdt)

    # fused value / advantage / dueling-combine: directly produces Q, padded
    # to 128 lanes for a lane-dense MXU pass; slice the real action columns.
    q = jnp.dot(h, wh2_ref[...], preferred_element_type=jnp.float32) + bh2_ref[...]
    q_ref[...] = q[:, : q_ref.shape[-1]].astype(q_ref.dtype)


def _fuse_head_params(p, action_dim, compute_dtype):
    """Fuse the two heads and fold the dueling combine into the last weight."""
    a = action_dim
    a_pad = ((a + 127) // 128) * 128          # pad last matmul to >= 128 lanes

    # first head layer: [wv1 | wa1]  -> (64, 64)
    wh1 = jnp.concatenate([p["wv1"], p["wa1"]], axis=1)
    bh1 = jnp.concatenate([p["bv1"], p["ba1"]], axis=1)

    # second head layer folds  Q = V + (A - mean_a A)  into one matmul
    wa2_centered = p["wa2"] - jnp.mean(p["wa2"], axis=1, keepdims=True)   # (32, A)
    wv2_bcast = jnp.broadcast_to(p["wv2"], (p["wv2"].shape[0], a))        # (32, A)
    wh2 = jnp.concatenate([wv2_bcast, wa2_centered], axis=0)              # (64, A)
    wh2 = jnp.pad(wh2, ((0, 0), (0, a_pad - a)))                          # (64, a_pad)
    bh2 = p["bv2"] + (p["ba2"] - jnp.mean(p["ba2"]))                      # (1, A)
    bh2 = jnp.pad(bh2, ((0, 0), (0, a_pad - a)))                          # (1, a_pad)

    fused = dict(
        w1=p["w1"].astype(compute_dtype), b1=p["b1"].astype(jnp.float32),
        w2=p["w2"].astype(compute_dtype), b2=p["b2"].astype(jnp.float32),
        wh1=wh1.astype(compute_dtype),    bh1=bh1.astype(jnp.float32),
        wh2=wh2.astype(compute_dtype),    bh2=bh2.astype(jnp.float32),
    )
    return fused, a_pad


def dueling_dqn_forward(x, params, *, compute_dtype=jnp.bfloat16, tile_b=512):
    """x: (batch, state_dim) f32; params: dict of pre-transposed (in, out) weights."""
    batch, state_dim = x.shape
    action_dim = params["wa2"].shape[1]

    fused, a_pad = _fuse_head_params(params, action_dim, compute_dtype)

    # Batch tile: multiple of 8 for f32/bf16 sublanes; if the whole batch is
    # smaller than one tile, a single full-array block is always legal.
    if batch <= tile_b:
        tile_b = batch
    grid = (pl.cdiv(batch, tile_b),)

    x_c = x.astype(compute_dtype)

    args = (x_c,
            fused["w1"], fused["b1"],
            fused["w2"], fused["b2"],
            fused["wh1"], fused["bh1"],
            fused["wh2"], fused["bh2"])

    def resident(arr):                      # weights/biases: VMEM-resident
        return pl.BlockSpec(arr.shape, lambda i: (0, 0))

    in_specs = [pl.BlockSpec((tile_b, state_dim), lambda i: (i, 0))]
    in_specs += [resident(a) for a in args[1:]]
    out_spec = pl.BlockSpec((tile_b, action_dim), lambda i: (i, 0))

    itemsize = jnp.dtype(compute_dtype).itemsize
    weight_bytes = sum(int(a.size) * a.dtype.itemsize for a in args[1:])
    flops = 2 * batch * (state_dim * 128 + 128 * 64 + 64 * 64 + 64 * a_pad)
    bytes_accessed = (batch * state_dim * itemsize          # x stream
                      + batch * action_dim * 4              # q stream
                      + weight_bytes)                       # resident weights

    return pl.pallas_call(
        dueling_dqn_kernel,
        out_shape=jax.ShapeDtypeStruct((batch, action_dim), jnp.float32),
        grid=grid,
        in_specs=in_specs,
        out_specs=out_spec,
        compiler_params=pltpu.CompilerParams(
            dimension_semantics=("parallel",),
            vmem_limit_bytes=32 * 1024 * 1024),
        cost_estimate=pl.CostEstimate(flops=flops, transcendentals=0,
                                      bytes_accessed=bytes_accessed),
    )(*args)


def init_params(key, state_dim, action_dim):
    """Deterministic synthetic init. Weights stored as (in, out) = W.T of PyTorch."""
    def lin(k, fan_in, fan_out):
        kw, kb = jax.random.split(k)
        bound = 1.0 / jnp.sqrt(fan_in)
        w = jax.random.uniform(kw, (fan_in, fan_out), jnp.float32, -bound, bound)
        b = jax.random.uniform(kb, (1, fan_out), jnp.float32, -bound, bound)
        return w, b

    keys = jax.random.split(key, 6)
    w1, b1 = lin(keys[0], state_dim, 128)
    w2, b2 = lin(keys[1], 128, 64)
    wv1, bv1 = lin(keys[2], 64, 32)
    wv2, bv2 = lin(keys[3], 32, 1)
    wa1, ba1 = lin(keys[4], 64, 32)
    wa2, ba2 = lin(keys[5], 32, action_dim)
    return dict(w1=w1, b1=b1, w2=w2, b2=b2,
                wv1=wv1, bv1=bv1, wv2=wv2, bv2=bv2,
                wa1=wa1, ba1=ba1, wa2=wa2, ba2=ba2)


def reference_forward(x, p):
    """Pure-JAX f32 reference replicating the PyTorch forward semantics."""
    relu = lambda t: jnp.maximum(t, 0.0)
    dot = lambda a, b: jnp.dot(a, b, precision=jax.lax.Precision.HIGHEST)
    h = relu(dot(x, p["w1"]) + p["b1"])
    h = relu(dot(h, p["w2"]) + p["b2"])
    value = dot(relu(dot(h, p["wv1"]) + p["bv1"]), p["wv2"]) + p["bv2"]
    adv = dot(relu(dot(h, p["wa1"]) + p["ba1"]), p["wa2"]) + p["ba2"]
    return value + (adv - adv.mean(axis=1, keepdims=True))


if __name__ == "__main__":
    state_dim = 16
    action_dim = 4
    batch = 2

    key = jax.random.PRNGKey(0)
    kx, kp = jax.random.split(key)
    x = jax.random.normal(kx, (batch, state_dim), dtype=jnp.float32)
    params = init_params(kp, state_dim, action_dim)

    q_ref = reference_forward(x, params)

    # f32 matmul path: tight check of the fused-head / dueling-fold structure.
    q_f32 = jax.block_until_ready(
        dueling_dqn_forward(x, params, compute_dtype=jnp.float32))
    assert q_f32.shape == (batch, action_dim)
    assert jnp.allclose(q_f32, q_ref, atol=2e-3, rtol=2e-3), (q_f32, q_ref)

    # bf16 matmul-input path (v6e/v7x fast path): f32 accumulation, looser tol.
    q_bf16 = jax.block_until_ready(
        dueling_dqn_forward(x, params, compute_dtype=jnp.bfloat16))
    assert q_bf16.shape == (batch, action_dim)
    assert jnp.allclose(q_bf16, q_ref, atol=5e-2, rtol=5e-2), (q_bf16, q_ref)

    print("KERNEL_OK")
</pallas_src>

<mosaic_0001>
module attributes {stable_mosaic.version = 11 : i64} {
  func.func @dueling_dqn_kernel(%arg0: i32, %arg1: memref<2x16xf32, #tpu.memory_space<vmem>>, %arg2: memref<16x128xf32, #tpu.memory_space<vmem>>, %arg3: memref<1x128xf32, #tpu.memory_space<vmem>>, %arg4: memref<128x64xf32, #tpu.memory_space<vmem>>, %arg5: memref<1x64xf32, #tpu.memory_space<vmem>>, %arg6: memref<64x64xf32, #tpu.memory_space<vmem>>, %arg7: memref<1x64xf32, #tpu.memory_space<vmem>>, %arg8: memref<64x128xf32, #tpu.memory_space<vmem>>, %arg9: memref<1x128xf32, #tpu.memory_space<vmem>>, %arg10: memref<2x4xf32, #tpu.memory_space<vmem>>) attributes {dimension_semantics = [#tpu.dimension_semantics<parallel>], iteration_bounds = array<i64: 1>, scalar_prefetch = 0 : i64, scratch_operands = 0 : i64, tpu.core_type = #tpu.core_type<tc>, window_params = [{transform_indices = @transform_0, window_bounds = array<i64: 2, 16>}, {pipeline_mode = #tpu.pipeline_mode<synchronous>, transform_indices = @transform_1, window_bounds = array<i64: 16, 128>}, {pipeline_mode = #tpu.pipeline_mode<synchronous>, transform_indices = @transform_2, window_bounds = array<i64: 1, 128>}, {pipeline_mode = #tpu.pipeline_mode<synchronous>, transform_indices = @transform_3, window_bounds = array<i64: 128, 64>}, {pipeline_mode = #tpu.pipeline_mode<synchronous>, transform_indices = @transform_4, window_bounds = array<i64: 1, 64>}, {pipeline_mode = #tpu.pipeline_mode<synchronous>, transform_indices = @transform_5, window_bounds = array<i64: 64, 64>}, {pipeline_mode = #tpu.pipeline_mode<synchronous>, transform_indices = @transform_6, window_bounds = array<i64: 1, 64>}, {pipeline_mode = #tpu.pipeline_mode<synchronous>, transform_indices = @transform_7, window_bounds = array<i64: 64, 128>}, {pipeline_mode = #tpu.pipeline_mode<synchronous>, transform_indices = @transform_8, window_bounds = array<i64: 1, 128>}, {transform_indices = @transform_9, window_bounds = array<i64: 2, 4>}]} {
    %c0 = arith.constant 0 : index
    %c0_0 = arith.constant 0 : index
    %0 = vector.load %arg1[%c0, %c0_0] : memref<2x16xf32, #tpu.memory_space<vmem>>, vector<2x16xf32>
    %c0_1 = arith.constant 0 : index
    %c0_2 = arith.constant 0 : index
    %1 = vector.load %arg2[%c0_1, %c0_2] : memref<16x128xf32, #tpu.memory_space<vmem>>, vector<16x128xf32>
    %cst = arith.constant dense<0.000000e+00> : vector<2x128xf32>
    %2 = tpu.matmul %0, %1, %cst {dimension_numbers = #tpu.dot_dimension_numbers<[1], [0], [0], [1], [0, 0, 1, 1], [], []>} : vector<2x16xf32>, vector<16x128xf32>, vector<2x128xf32> -> vector<2x128xf32>
    %c0_3 = arith.constant 0 : index
    %c0_4 = arith.constant 0 : index
    %3 = vector.load %arg3[%c0_3, %c0_4] : memref<1x128xf32, #tpu.memory_space<vmem>>, vector<1x128xf32>
    %4 = vector.broadcast %3 : vector<1x128xf32> to vector<2x128xf32>
    %5 = arith.addf %2, %4 : vector<2x128xf32>
    %cst_5 = arith.constant 0.000000e+00 : f32
    %6 = vector.broadcast %cst_5 : f32 to vector<2x128xf32>
    %7 = arith.maximumf %5, %6 : vector<2x128xf32>
    %c0_6 = arith.constant 0 : index
    %c0_7 = arith.constant 0 : index
    %8 = vector.load %arg4[%c0_6, %c0_7] : memref<128x64xf32, #tpu.memory_space<vmem>>, vector<128x64xf32>
    %cst_8 = arith.constant dense<0.000000e+00> : vector<2x64xf32>
    %9 = tpu.matmul %7, %8, %cst_8 {dimension_numbers = #tpu.dot_dimension_numbers<[1], [0], [0], [1], [0, 0, 1, 1], [], []>} : vector<2x128xf32>, vector<128x64xf32>, vector<2x64xf32> -> vector<2x64xf32>
    %c0_9 = arith.constant 0 : index
    %c0_10 = arith.constant 0 : index
    %10 = vector.load %arg5[%c0_9, %c0_10] : memref<1x64xf32, #tpu.memory_space<vmem>>, vector<1x64xf32>
    %11 = vector.broadcast %10 : vector<1x64xf32> to vector<2x64xf32>
    %12 = arith.addf %9, %11 : vector<2x64xf32>
    %cst_11 = arith.constant 0.000000e+00 : f32
    %13 = vector.broadcast %cst_11 : f32 to vector<2x64xf32>
    %14 = arith.maximumf %12, %13 : vector<2x64xf32>
    %c0_12 = arith.constant 0 : index
    %c0_13 = arith.constant 0 : index
    %15 = vector.load %arg6[%c0_12, %c0_13] : memref<64x64xf32, #tpu.memory_space<vmem>>, vector<64x64xf32>
    %cst_14 = arith.constant dense<0.000000e+00> : vector<2x64xf32>
    %16 = tpu.matmul %14, %15, %cst_14 {dimension_numbers = #tpu.dot_dimension_numbers<[1], [0], [0], [1], [0, 0, 1, 1], [], []>} : vector<2x64xf32>, vector<64x64xf32>, vector<2x64xf32> -> vector<2x64xf32>
    %c0_15 = arith.constant 0 : index
    %c0_16 = arith.constant 0 : index
    %17 = vector.load %arg7[%c0_15, %c0_16] : memref<1x64xf32, #tpu.memory_space<vmem>>, vector<1x64xf32>
    %18 = vector.broadcast %17 : vector<1x64xf32> to vector<2x64xf32>
    %19 = arith.addf %16, %18 : vector<2x64xf32>
    %cst_17 = arith.constant 0.000000e+00 : f32
    %20 = vector.broadcast %cst_17 : f32 to vector<2x64xf32>
    %21 = arith.maximumf %19, %20 : vector<2x64xf32>
    %c0_18 = arith.constant 0 : index
    %c0_19 = arith.constant 0 : index
    %22 = vector.load %arg8[%c0_18, %c0_19] : memref<64x128xf32, #tpu.memory_space<vmem>>, vector<64x128xf32>
    %cst_20 = arith.constant dense<0.000000e+00> : vector<2x128xf32>
    %23 = tpu.matmul %21, %22, %cst_20 {dimension_numbers = #tpu.dot_dimension_numbers<[1], [0], [0], [1], [0, 0, 1, 1], [], []>} : vector<2x64xf32>, vector<64x128xf32>, vector<2x128xf32> -> vector<2x128xf32>
    %c0_21 = arith.constant 0 : index
    %c0_22 = arith.constant 0 : index
    %24 = vector.load %arg9[%c0_21, %c0_22] : memref<1x128xf32, #tpu.memory_space<vmem>>, vector<1x128xf32>
    %25 = vector.broadcast %24 : vector<1x128xf32> to vector<2x128xf32>
    %26 = arith.addf %23, %25 : vector<2x128xf32>
    %27 = vector.extract_strided_slice %26 {offsets = [0, 0], sizes = [2, 4], strides = [1, 1]} : vector<2x128xf32> to vector<2x4xf32>
    %c0_23 = arith.constant 0 : index
    %c0_24 = arith.constant 0 : index
    %28 = vector.load %arg10[%c0_23, %c0_24] : memref<2x4xf32, #tpu.memory_space<vmem>>, vector<2x4xf32>
    tpu.vector_store %arg10[%c0_23, %c0_24], %27 {strides = array<i32>} : memref<2x4xf32, #tpu.memory_space<vmem>>, vector<2x4xf32>,
    return
  }
  func.func @transform_0(%arg0: i32) -> (i32, i32) {
    %c0_i32 = arith.constant 0 : i32
    %c0_i32_0 = arith.constant 0 : i32
    return %arg0, %c0_i32 : i32, i32
  }
  func.func @transform_1(%arg0: i32) -> (i32, i32) {
    %c0_i32 = arith.constant 0 : i32
    %c0_i32_0 = arith.constant 0 : i32
    %c0_i32_1 = arith.constant 0 : i32
    return %c0_i32, %c0_i32_0 : i32, i32
  }
  func.func @transform_2(%arg0: i32) -> (i32, i32) {
    %c0_i32 = arith.constant 0 : i32
    %c0_i32_0 = arith.constant 0 : i32
    %c0_i32_1 = arith.constant 0 : i32
    return %c0_i32, %c0_i32_0 : i32, i32
  }
  func.func @transform_3(%arg0: i32) -> (i32, i32) {
    %c0_i32 = arith.constant 0 : i32
    %c0_i32_0 = arith.constant 0 : i32
    %c0_i32_1 = arith.constant 0 : i32
    return %c0_i32, %c0_i32_0 : i32, i32
  }
  func.func @transform_4(%arg0: i32) -> (i32, i32) {
    %c0_i32 = arith.constant 0 : i32
    %c0_i32_0 = arith.constant 0 : i32
    %c0_i32_1 = arith.constant 0 : i32
    return %c0_i32, %c0_i32_0 : i32, i32
  }
  func.func @transform_5(%arg0: i32) -> (i32, i32) {
    %c0_i32 = arith.constant 0 : i32
    %c0_i32_0 = arith.constant 0 : i32
    %c0_i32_1 = arith.constant 0 : i32
    return %c0_i32, %c0_i32_0 : i32, i32
  }
  func.func @transform_6(%arg0: i32) -> (i32, i32) {
    %c0_i32 = arith.constant 0 : i32
    %c0_i32_0 = arith.constant 0 : i32
    %c0_i32_1 = arith.constant 0 : i32
    return %c0_i32, %c0_i32_0 : i32, i32
  }
  func.func @transform_7(%arg0: i32) -> (i32, i32) {
    %c0_i32 = arith.constant 0 : i32
    %c0_i32_0 = arith.constant 0 : i32
    %c0_i32_1 = arith.constant 0 : i32
    return %c0_i32, %c0_i32_0 : i32, i32
  }
  func.func @transform_8(%arg0: i32) -> (i32, i32) {
    %c0_i32 = arith.constant 0 : i32
    %c0_i32_0 = arith.constant 0 : i32
    %c0_i32_1 = arith.constant 0 : i32
    return %c0_i32, %c0_i32_0 : i32, i32
  }
  func.func @transform_9(%arg0: i32) -> (i32, i32) {
    %c0_i32 = arith.constant 0 : i32
    %c0_i32_0 = arith.constant 0 : i32
    return %arg0, %c0_i32 : i32, i32
  }
}

</mosaic_0001>

<bundles_post_ra>
// kernel: tpu_custom_call.1
= control target key start
LH: loop header
LB: loop body
LE: loop exit
PB: predicated region body
PF: predicated region fallthrough
CT: control target
= control target key end

     0   :  { %v610_v2 = vmov 0.0|0.0   ;;  %vm611_vm0 = vmmov 0   ;;  %v612_v4 = vmov 0.0   ;;  %vm43_vm1 = vcmask 130048   ;;  %s820_s0 = inlined_call_operand.vmem [shape: f32[2,16], index: 0, kind: input, shape index: {}]   ;;  %s821_s1 = inlined_call_operand.vmem [shape: f32[16,128], index: 1, kind: input, shape index: {}]   ;;  %s822_s2 = inlined_call_operand.vmem [shape: f32[1,128], index: 2, kind: input, shape index: {}]   ;;  %s823_s3 = inlined_call_operand.vmem [shape: f32[128,64], index: 3, kind: input, shape index: {}]   ;;  %s824_s4 = inlined_call_operand.vmem [shape: f32[1,64], index: 4, kind: input, shape index: {}]   ;;  %s825_s5 = inlined_call_operand.vmem [shape: f32[64,64], index: 5, kind: input, shape index: {}]   ;;  %s826_s6 = inlined_call_operand.vmem [shape: f32[1,64], index: 6, kind: input, shape index: {}]   ;;  %s827_s7 = inlined_call_operand.vmem [shape: f32[64,128], index: 7, kind: input, shape index: {}]   ;;  %s828_s8 = inlined_call_operand.vmem [shape: f32[1,128], index: 8, kind: input, shape index: {}]   ;;  %s829_s9 = inlined_call_operand.hbm [shape: f32[2,4], index: 9, kind: output, shape index: {}]  }
   0x1   :  { %v34_v0 = vld [vmem:[%s821_s1] sm:$0xff]  ;;  %v35_v1 = vld [vmem:[%s821_s1 + $0x8] sm:$0xff]  ;;  %531 = vmatprep.subr.bf16.mxu0 %v610_v2  ;;  %455 = vmatprep.mubr.msk.f32.mxu0 %vm611_vm0, %v612_v4  ;;  %v120_v8 = vld [vmem:[%s823_s3 + $0x10] sm:$0xff] }
   0x2   :  { %v532_v3 = vpack.c.bf16 %v35_v1, %v34_v0  ;;  %v118_v5 = vld [vmem:[%s823_s3] sm:$0xff]  ;;  %v119_v6 = vld [vmem:[%s823_s3 + $0x8] sm:$0xff]  ;;  %534 = vmatprep.subr.bf16.mxu1 %v610_v2  ;;  %v121_v9 = vld [vmem:[%s823_s3 + $0x18] sm:$0xff]  ;;  %490 = vmatprep.mubr.msk.f32.mxu1 %vm611_vm0, %v612_v4 }
   0x3   :  { %v535_v7 = vpack.c.bf16 %v119_v6, %v118_v5  ;;  %v33_v10 = vld [vmem:[%s820_s0] sm:$0x3]  ;;  %v538_v11 = vpack.c.bf16 %v121_v9, %v120_v8  ;;  %v123_v13 = vld [vmem:[%s823_s3 + $0x28] sm:$0xff] }
   0x4   :  { %533 = vmatpush3.bf16.msra.mxu0 %v532_v3  ;;  %v122_v12 = vld [vmem:[%s823_s3 + $0x20] sm:$0xff] }
   0x5   :  { %536 = vmatpush3.bf16.msra.mxu1 %v535_v7  ;;  %558 = vmatprep.subr.bf16.mxu0 %v610_v2 }
   0x6   :  { %537 = vmatprep.subr.bf16.mxu1 %v610_v2 }
   0x7   :  { %456 = vmatmul.mubr.msk.f32.vlgmr.msra.gmra.mrb[0].mxu0 %vm43_vm1, %v33_v10 }
   0x8   :  { %14 = vsyncpa [#allocation3], 0  ;;  %509 = vmatprep.mubr.msk.f32.mxu0 %vm611_vm0, %v612_v4  ;;  %v541_v14 = vpack.c.bf16 %v123_v13, %v122_v12  ;;  %v124_v15 = vld [vmem:[%s823_s3 + $0x30] sm:$0xff]  ;;  %v125_v16 = vld [vmem:[%s823_s3 + $0x38] sm:$0xff]  ;;  %vm227_vm2 = vcmask 523264   ;;  %s613_s13 = smov [#allocation2]  }
   0x9   :  { %539 = vmatpush3.bf16.msra.mxu1 %v538_v11  ;;  %v544_v17 = vpack.c.bf16 %v125_v16, %v124_v15  ;;  %v126_v18 = vld [vmem:[%s823_s3 + $0x40] sm:$0xff]  ;;  %v127_v19 = vld [vmem:[%s823_s3 + $0x48] sm:$0xff]  ;;  %v128_v21 = vld [vmem:[%s823_s3 + $0x50] sm:$0xff]  ;;  %s398_s14 = sshll.u32 %s613_s13, 4  ;;  %vm390_vm3 = vcmask 25600   ;;  %s399_s14 = int_to_ptr.vmem [resolvable:$true] %s398_s14 }
   0xa   :  { %540 = vmatprep.subr.bf16.mxu1 %v610_v2  ;;  %v547_v20 = vpack.c.bf16 %v127_v19, %v126_v18  ;;  %v129_v22 = vld [vmem:[%s823_s3 + $0x58] sm:$0xff]  ;;  %v130_v24 = vld [vmem:[%s823_s3 + $0x60] sm:$0xff]  ;;  %v131_v25 = vld [vmem:[%s823_s3 + $0x68] sm:$0xff]  ;;  %p591_p1 = scmp.lt.s32.totalorder %s399_s14, %s399_s14 }
   0xb   :  { %v550_v23 = vpack.c.bf16 %v129_v22, %v128_v21  ;;  %v553_v26 = vpack.c.bf16 %v131_v25, %v130_v24  ;;  %v132_v27 = vld [vmem:[%s823_s3 + $0x70] sm:$0xff]  ;;  %v133_v28 = vld [vmem:[%s823_s3 + $0x78] sm:$0xff]  ;;  %v212_v30 = vld [vmem:[%s825_s5] sm:$0xff] }
   0xc   :  { %v556_v29 = vpack.c.bf16 %v133_v28, %v132_v27  ;;  %v213_v31 = vld [vmem:[%s825_s5 + $0x8] sm:$0xff]  ;;  %v214_v32 = vld [vmem:[%s825_s5 + $0x10] sm:$0xff]  ;;  %v215_v34 = vld [vmem:[%s825_s5 + $0x18] sm:$0xff] }
   0xd   :  { %542 = vmatpush3.bf16.msra.mxu1 %v541_v14  ;;  %v559_v33 = vpack.c.bf16 %v213_v31, %v212_v30  ;;  %v562_v35 = vpack.c.bf16 %v215_v34, %v214_v32  ;;  %v216_v36 = vld [vmem:[%s825_s5 + $0x20] sm:$0xff]  ;;  %v217_v37 = vld [vmem:[%s825_s5 + $0x28] sm:$0xff]  ;;  %v218_v44 = vld [vmem:[%s825_s5 + $0x30] sm:$0xff] }
   0xe   :  { %543 = vmatprep.subr.bf16.mxu1 %v610_v2  ;;  %v565_v38 = vpack.c.bf16 %v217_v37, %v216_v36  ;;  %v406_v39 = vld [vmem:[%s822_s2] ss:$0 sm:$0xff]  ;;  %v219_v45 = vld [vmem:[%s825_s5 + $0x38] sm:$0xff]  ;;  %v303_v49 = vld [vmem:[%s827_s7 + $0x8] sm:$0xff] }
   0xf   :  { %560 = vmatpush3.bf16.msra.mxu0 %v559_v33  ;;  %v568_v46 = vpack.c.bf16 %v219_v45, %v218_v44  ;;  %v408_v47 = vld [vmem:[%s824_s4] ss:$0 sm:$0xff]  ;;  %v304_v55 = vld [vmem:[%s827_s7 + $0x10] sm:$0xff]  ;;  %v305_v56 = vld [vmem:[%s827_s7 + $0x18] sm:$0xff] }
  0x10   :  { %561 = vmatprep.subr.bf16.mxu0 %v610_v2  ;;  %v302_v48 = vld [vmem:[%s827_s7] sm:$0xff]  ;;  %v574_v57 = vpack.c.bf16 %v305_v56, %v304_v55  ;;  %v307_v59 = vld [vmem:[%s827_s7 + $0x28] sm:$0xff]  ;;  %v308_v61 = vld [vmem:[%s827_s7 + $0x30] sm:$0xff] }
  0x11   :  { %545 = vmatpush3.bf16.msra.mxu1 %v544_v17  ;;  %v571_v53 = vpack.c.bf16 %v303_v49, %v302_v48  ;;  %v306_v58 = vld [vmem:[%s827_s7 + $0x20] sm:$0xff]  ;;  %v309_v62 = vld [vmem:[%s827_s7 + $0x38] sm:$0xff]  ;;  %s586_s7 = scalar_lea.vmem %s399_s14, 32 }
  0x12   :  { %546 = vmatprep.subr.bf16.mxu1 %v610_v2  ;;  %v577_v60 = vpack.c.bf16 %v307_v59, %v306_v58  ;;  %v580_v63 = vpack.c.bf16 %v309_v62, %v308_v61  ;;  %v409_v0 = vld [vmem:[%s826_s6] ss:$0 sm:$0xff]  ;;  %p587_p0 = scmp.ne.s32.totalorder %s399_s14, %s586_s7  ;;  %p592_p2 = scmp.lt.s32.totalorder %s586_s7, %s586_s7 }
  0x13   :  { %563 = vmatpush3.bf16.msra.mxu0 %v562_v35 }
  0x14   :  { %564 = vmatprep.subr.bf16.mxu0 %v610_v2  ;;  %p593_p3 = por %p592_p2, %p591_p1 }
  0x15   :  { %548 = vmatpush3.bf16.msra.mxu1 %v547_v20 }
  0x16   :  { %549 = vmatprep.subr.bf16.mxu1 %v610_v2  ;;  %p594_p4 = pnand %p593_p3, %p587_p0 }
  0x17   :  { %566 = vmatpush3.bf16.msra.mxu0 %v565_v38 }
  0x18   :  { %567 = vmatprep.subr.bf16.mxu0 %v610_v2 }
  0x19   :  { %551 = vmatpush3.bf16.msra.mxu1 %v550_v23 }
  0x1a   :  { %552 = vmatprep.subr.bf16.mxu1 %v610_v2 }
  0x1b   :  { %569 = vmatpush3.bf16.msra.mxu0 %v568_v46 }
  0x1c   :  { %570 = vmatprep.subr.bf16.mxu0 %v610_v2 }
  0x1d   :  { %554 = vmatpush3.bf16.msra.mxu1 %v553_v26 }
  0x1e   :  { %555 = vmatprep.subr.bf16.mxu1 %v610_v2 }
  0x21   :  { %557 = vmatpush3.bf16.msra.mxu1 %v556_v29 }
  0xda   :  { %v113_v40 = vpop.f32.mrb[0].mxu0 }
  0xdb   :  { %v114_v41 = vadd.f32 %v406_v39, %v113_v40  ;;  %v457_v42 = vpop.f32.mrb[1].mxu0 }
  0xdd   :  { %v117_v43 = vmax.f32 %v114_v41, 0.0 }
  0xdf   :  { %491 = vmatmul.mubr.f32.vlgmr.msra.gmra.mrb[0].mxu1 %v117_v43 }
 0x1b2   :  { %v207_v50 = vpop.f32.mrb[0].mxu1 }
 0x1b3   :  { %v208_v51 = vadd.f32 %v408_v47, %v207_v50  ;;  %v492_v52 = vpop.f32.mrb[1].mxu1 }
 0x1b5   :  { %v211_v54 = vmax.f32 %v208_v51, 0.0 }
 0x1b7   :  { %510 = vmatmul.mubr.msk.f32.vlgmr.msra.gmra.mrb[2].mxu0 %vm227_vm2, %v211_v54 }
 0x1b8   :  { %572 = vmatpush3.bf16.msra.mxu0 %v571_v53  ;;  %528 = vmatprep.mubr.msk.f32.mxu0 %vm611_vm0, %v612_v4 }
 0x1b9   :  { %573 = vmatprep.subr.bf16.mxu0 %v610_v2 }
 0x1bc   :  { %575 = vmatpush3.bf16.msra.mxu0 %v574_v57 }
 0x1bd   :  { %576 = vmatprep.subr.bf16.mxu0 %v610_v2 }
 0x1c0   :  { %578 = vmatpush3.bf16.msra.mxu0 %v577_v60 }
 0x1c1   :  { %579 = vmatprep.subr.bf16.mxu0 %v610_v2  ;;  %v411_v2 = vld [vmem:[%s828_s8] ss:$0 sm:$0xff] }
 0x1c4   :  { %581 = vmatpush3.bf16.msra.mxu0 %v580_v63 }
 0x28a   :  { %v297_v1 = vpop.f32.mrb[2].mxu0 }
 0x28b   :  { %v298_v3 = vadd.f32 %v409_v0, %v297_v1  ;;  %v511_v4 = vpop.f32.mrb[3].mxu0 }
 0x28d   :  { %v301_v5 = vmax.f32 %v298_v3, 0.0 }
 0x28f   :  { %529 = vmatmul.mubr.msk.f32.vlgmr.msra.gmra.mrb[4].mxu0 %vm227_vm2, %v301_v5 }
 0x362   :  { %v386_v6 = vpop.f32.mrb[4].mxu0 }
 0x363   :  { %v387_v7 = vadd.f32 %v411_v2, %v386_v6  ;;  %v530_v8 = vpop.f32.mrb[5].mxu0 }
 0x365   :  { %391 = vst.msk [vmem:[#allocation2] sm:$0x3] %vm390_vm3, %v387_v7 }
 0x366   :  { %597 = shalt.err (!%p594_p4)
}
 0x367   :  { %s598_s16 = scalar_lea.hbm %s829_s9, 32 }
 0x368   :  { %p599_p5 = scmp.ne.s32.totalorder %s829_s9, %s598_s16  ;;  %p602_p6 = scmp.lt.u32.totalorder %s598_s16, %s829_s9 }
 0x36a   :  { %p604_p7 = pnand %p602_p6, %p599_p5 }
 0x36c   :  { %607 = shalt.err (!%p604_p7)
}
 0x36d   :  { %401 = dma.vmem_to_hbm [thread:$0]  %s399_s14, 32, %s829_s9, [#allocation3]  }
 0x36e   :  { %608 = dma.done.wait [#allocation3], 32  }
 0x36f   :  { %609 = vsyncadd [#allocation3], 4294967264 }
 0x370   :  { %405 = vsyncpa [#allocation3], 1 }

</bundles_post_ra>
